<compile_context>
chip_gen: v7x
topology: tpu7x:2x2x1
jax: 0.10.0
libtpu: 0.0.40
codegen_flags: <defaults>
</compile_context>

<pallas_src>
import jax
import jax.numpy as jnp
from jax.experimental import pallas as pl
from jax.experimental.pallas import tpu as pltpu

N = 8   # number of samples (key length)
F = 4   # feature dim of Linear(4, 4)

# Packed slab layout, (16, 128) f32 (one VMEM tile pair, one DMA):
#   rows 0..N-1   : lanes 0..F-1 = value[i, :], lane F = 1.0, rest 0
#   rows N..N+F-1 : lanes 0..F-1 = W[j, :] (torch layout), lane F = b[j],
#                   lane F+1 = y[-1][j], rest 0
#   rows N+F..15  : zero padding (sublane alignment)
SLAB_ROWS = 16
SLAB_LANES = 128


def _argmax_mse_kernel(key_ref, slab_ref, out_ref):
    # key_ref : (N,)        f32 in SMEM  (scalar path)
    # slab_ref: (16, 128)   f32 in VMEM  (packed value / W / b / y_last)
    # out_ref : (1, 1)      f32 in SMEM  (scalar loss)

    # ---- scalar argmax over key (== key.sort() index[-1] for distinct keys) ----
    best_val = key_ref[0]
    best_idx = jnp.int32(0)
    for i in range(1, N):                      # static unroll, scalar ALU only
        v = key_ref[i]
        take = v >= best_val                   # >= : largest index wins ties
        best_val = jnp.where(take, v, best_val)
        best_idx = jnp.where(take, jnp.int32(i), best_idx)

    # ---- select row `idx` of the augmented value block (single dynamic vld) ----
    z_aug = slab_ref[pl.ds(best_idx, 1), :]    # (1, 128): [value[idx,:], 1, 0...]

    # ---- fc1 + bias via one broadcast multiply + lane reduction (VPU/XLU) ----
    w_blk = slab_ref[N:N + F, :]               # (F, 128): [W[j,:], b[j], y_last[j], 0...]
    # lane F of z_aug is 1.0 -> adds b[j]; lane F+1 of z_aug is 0 -> y_last ignored
    y_pred = jnp.sum(z_aug * w_blk, axis=1, keepdims=True)     # (F, 1)

    # ---- MSE against y[-1] ----
    y_last = w_blk[:, F + 1:F + 2]             # (F, 1)
    diff = y_pred - y_last
    out_ref[0, 0] = jnp.sum(diff * diff) * (1.0 / F)


@jax.jit
def test_argmax_forward(key, value, y, W, b):
    """key: (N,), value: (N, F), y: (N, F), W: (F, F) torch layout, b: (F,)."""
    key = key.astype(jnp.float32)
    value = value.astype(jnp.float32)
    W = W.astype(jnp.float32)
    b = b.astype(jnp.float32)
    y_last = y[-1].astype(jnp.float32)                 # (F,), only row we need

    n, f = value.shape

    # Build the single packed, lane-padded slab (one DMA instead of five).
    slab = jnp.zeros((SLAB_ROWS, SLAB_LANES), jnp.float32)
    slab = slab.at[0:n, 0:f].set(value)
    slab = slab.at[0:n, f].set(1.0)                    # augmentation lane -> bias add
    slab = slab.at[n:n + f, 0:f].set(W)
    slab = slab.at[n:n + f, f].set(b)
    slab = slab.at[n:n + f, f + 1].set(y_last)

    out = pl.pallas_call(
        _argmax_mse_kernel,
        out_shape=jax.ShapeDtypeStruct((1, 1), jnp.float32),
        in_specs=[
            pl.BlockSpec(memory_space=pltpu.SMEM),     # key  (N,)  -> scalar path
            pl.BlockSpec(memory_space=pltpu.VMEM),     # slab (16, 128)
        ],
        out_specs=pl.BlockSpec(memory_space=pltpu.SMEM),
    )(key, slab)
    return out[0, 0]


if __name__ == "__main__":
    rng = jax.random.PRNGKey(0)
    k_key, k_val, k_y, k_w, k_b = jax.random.split(rng, 5)

    key = jax.random.normal(k_key, (N,), dtype=jnp.float32)
    value = jax.random.normal(k_val, (N, F), dtype=jnp.float32)
    y = jax.random.normal(k_y, (N, F), dtype=jnp.float32)

    # deterministic Linear(4, 4) params (torch layout: W[out, in], b[out])
    bound = 1.0 / jnp.sqrt(F)
    W = jax.random.uniform(k_w, (F, F), minval=-bound, maxval=bound,
                           dtype=jnp.float32)
    b = jax.random.uniform(k_b, (F,), minval=-bound, maxval=bound,
                           dtype=jnp.float32)

    loss = test_argmax_forward(key, value, y, W, b)
    jax.block_until_ready(loss)

    # pure-JAX reference of forward5
    idx_ref = jnp.argsort(key)[-1]
    newvalue = value @ W.T + b
    ref = jnp.mean((newvalue[idx_ref] - y[-1]) ** 2)
    assert jnp.allclose(loss, ref, rtol=1e-5, atol=1e-5), (loss, ref)

    print("KERNEL_OK")
</pallas_src>

<mosaic_0001>
module attributes {stable_mosaic.version = 11 : i64} {
  func.func @_argmax_mse_kernel(%arg0: memref<8xf32, #tpu.memory_space<smem>>, %arg1: memref<16x128xf32, #tpu.memory_space<vmem>>, %arg2: memref<1x1xf32, #tpu.memory_space<smem>>) attributes {dimension_semantics = [], scalar_prefetch = 0 : i64, scratch_operands = 0 : i64, tpu.core_type = #tpu.core_type<tc>} {
    %c0 = arith.constant 0 : index
    %0 = memref.load %arg0[%c0] : memref<8xf32, #tpu.memory_space<smem>>
    %c1 = arith.constant 1 : index
    %1 = memref.load %arg0[%c1] : memref<8xf32, #tpu.memory_space<smem>>
    %2 = arith.cmpf oge, %1, %0 : f32
    %3 = arith.select %2, %1, %0 : f32
    %c1_i32 = arith.constant 1 : i32
    %c0_i32 = arith.constant 0 : i32
    %4 = arith.select %2, %c1_i32, %c0_i32 : i32
    %c2 = arith.constant 2 : index
    %5 = memref.load %arg0[%c2] : memref<8xf32, #tpu.memory_space<smem>>
    %6 = arith.cmpf oge, %5, %3 : f32
    %7 = arith.select %6, %5, %3 : f32
    %c2_i32 = arith.constant 2 : i32
    %8 = arith.select %6, %c2_i32, %4 : i32
    %c3 = arith.constant 3 : index
    %9 = memref.load %arg0[%c3] : memref<8xf32, #tpu.memory_space<smem>>
    %10 = arith.cmpf oge, %9, %7 : f32
    %11 = arith.select %10, %9, %7 : f32
    %c3_i32 = arith.constant 3 : i32
    %12 = arith.select %10, %c3_i32, %8 : i32
    %c4 = arith.constant 4 : index
    %13 = memref.load %arg0[%c4] : memref<8xf32, #tpu.memory_space<smem>>
    %14 = arith.cmpf oge, %13, %11 : f32
    %15 = arith.select %14, %13, %11 : f32
    %c4_i32 = arith.constant 4 : i32
    %16 = arith.select %14, %c4_i32, %12 : i32
    %c5 = arith.constant 5 : index
    %17 = memref.load %arg0[%c5] : memref<8xf32, #tpu.memory_space<smem>>
    %18 = arith.cmpf oge, %17, %15 : f32
    %19 = arith.select %18, %17, %15 : f32
    %c5_i32 = arith.constant 5 : i32
    %20 = arith.select %18, %c5_i32, %16 : i32
    %c6 = arith.constant 6 : index
    %21 = memref.load %arg0[%c6] : memref<8xf32, #tpu.memory_space<smem>>
    %22 = arith.cmpf oge, %21, %19 : f32
    %23 = arith.select %22, %21, %19 : f32
    %c6_i32 = arith.constant 6 : i32
    %24 = arith.select %22, %c6_i32, %20 : i32
    %c7 = arith.constant 7 : index
    %25 = memref.load %arg0[%c7] : memref<8xf32, #tpu.memory_space<smem>>
    %26 = arith.cmpf oge, %25, %23 : f32
    %c7_i32 = arith.constant 7 : i32
    %27 = arith.select %26, %c7_i32, %24 : i32
    %28 = arith.index_cast %27 : i32 to index
    %c0_0 = arith.constant 0 : index
    %29 = vector.load %arg1[%28, %c0_0] : memref<16x128xf32, #tpu.memory_space<vmem>>, vector<1x128xf32>
    %c8 = arith.constant 8 : index
    %c0_1 = arith.constant 0 : index
    %30 = vector.load %arg1[%c8, %c0_1] : memref<16x128xf32, #tpu.memory_space<vmem>>, vector<4x128xf32>
    %31 = vector.broadcast %29 : vector<1x128xf32> to vector<4x128xf32>
    %32 = arith.mulf %31, %30 : vector<4x128xf32>
    %cst = arith.constant dense<0.000000e+00> : vector<4xf32>
    %33 = vector.multi_reduction <add>, %32, %cst [1] : vector<4x128xf32> to vector<4xf32>
    %34 = vector.shape_cast %33 : vector<4xf32> to vector<4x1xf32>
    %35 = vector.extract_strided_slice %30 {offsets = [0, 5], sizes = [4, 1], strides = [1, 1]} : vector<4x128xf32> to vector<4x1xf32>
    %36 = arith.subf %34, %35 : vector<4x1xf32>
    %37 = arith.mulf %36, %36 : vector<4x1xf32>
    %38 = vector.shape_cast %37 : vector<4x1xf32> to vector<1x4x1xf32>
    %cst_2 = arith.constant dense<0.000000e+00> : vector<1xf32>
    %39 = vector.multi_reduction <add>, %38, %cst_2 [1, 2] : vector<1x4x1xf32> to vector<1xf32>
    %40 = vector.shape_cast %39 : vector<1xf32> to vector<1x1x1xf32>
    %41 = vector.extract %40[0, 0, 0] : f32 from vector<1x1x1xf32>
    %cst_3 = arith.constant 2.500000e-01 : f32
    %42 = arith.mulf %41, %cst_3 : f32
    %c0_4 = arith.constant 0 : index
    %c0_5 = arith.constant 0 : index
    %43 = memref.load %arg2[%c0_4, %c0_5] : memref<1x1xf32, #tpu.memory_space<smem>>
    memref.store %42, %arg2[%c0_4, %c0_5] : memref<1x1xf32, #tpu.memory_space<smem>>
    return
  }
}

</mosaic_0001>

<bundles_post_ra>
// kernel: test_argmax_forward.1
= control target key start
LH: loop header
LB: loop body
LE: loop exit
PB: predicated region body
PF: predicated region fallthrough
CT: control target
= control target key end

     0   :  { %7 = vsyncpa [#allocation4], 0  ;;  %s178_s0 = inlined_call_operand.vmem [shape: f32[8], index: 0, kind: input, shape index: {}]   ;;  %s179_s1 = inlined_call_operand.vmem [shape: f32[16,128], index: 1, kind: input, shape index: {}]   ;;  %s180_s2 = inlined_call_operand.hbm [shape: f32[1,1], index: 2, kind: output, shape index: {}]  }
   0x1   :  { %8 = vsyncpa [#allocation3], 0  ;;  %s15_s11 = sshll.u32 %s178_s0, 4  ;;  %s16_s11 = int_to_ptr.vmem [resolvable:$true] %s15_s11 }
   0x2   :  { %s113_s12 = scalar_lea.vmem %s16_s11, 16  ;;  %p118_p1 = scmp.lt.s32.totalorder %s16_s11, %s16_s11 }
   0x3   :  { %p114_p0 = scmp.ne.s32.totalorder %s16_s11, %s113_s12  ;;  %p119_p2 = scmp.lt.s32.totalorder %s113_s12, %s113_s12 }
   0x5   :  { %p120_p3 = por %p119_p2, %p118_p1 }
   0x7   :  { %p121_p4 = pnand %p120_p3, %p114_p0 }
   0x9   :  { %124 = shalt.err (!%p121_p4)
}
   0xa   :  { %s139_s13 = smov [#allocation2]  }
   0xb   :  { %18 = dma.vmem_to_smem %s16_s11, 16, %s139_s13, [#allocation4]  }
   0xc   :  { %135 = dma.done.wait [#allocation4], 16  }
   0xd   :  { %136 = vsyncadd [#allocation4], 4294967280 }
   0xe   :  { %24 = sfence }
   0xf   :  { %s25_s14 = sld [smem:[#allocation2]]  ;;  %s100_s15 = sld [smem:[#allocation2 + $0x1]]  ;;  %v55_v0 = vld [vmem:[%s179_s1 + $0x8] sm:$0xf]  ;;  %vm61_vm0 = vcmask 1043456   ;;  %vm71_vm1 = vcmask 3072  }
  0x10   :  { %s101_s16 = sld [smem:[#allocation2 + $0x2]]  ;;  %s102_s17 = sld [smem:[#allocation2 + $0x3]] }
  0x11   :  { %s103_s18 = sld [smem:[#allocation2 + $0x4]]  ;;  %s104_s19 = sld [smem:[#allocation2 + $0x5]] }
  0x12   :  { %s105_s20 = sld [smem:[#allocation2 + $0x6]]  ;;  %s106_s21 = sld [smem:[#allocation2 + $0x7]] }
  0x13   :  { %s140_s27 = smov 123   ;;  %s125_s3 = scalar_lea.hbm %s180_s2, 16 }
  0x14   :  { %p126_p12 = scmp.ne.s32.totalorder %s180_s2, %s125_s3  ;;  %p129_p13 = scmp.lt.u32.totalorder %s125_s3, %s180_s2 }
  0x15   :  { %p27_p5 = scmp.ge.f32.partialorder %s100_s15, %s25_s14 }
  0x16   :  { %p131_p0 = pnand %p129_p13, %p126_p12 }
  0x17   :  { %s182_s15 = smov (!%p27_p5, %s100_s15), %s25_s14 }
  0x18   :  { %s29_s0 = scalar_select %p27_p5, 1, 0 }
  0x19   :  { %p31_p6 = scmp.ge.f32.partialorder %s101_s16, %s182_s15 }
  0x1b   :  { %s184_s16 = smov (!%p31_p6, %s101_s16), %s182_s15  ;;  %s186_s0 = smov (%p31_p6, %s29_s0), 2 }
  0x1c   :  { %p35_p7 = scmp.ge.f32.partialorder %s102_s17, %s184_s16 }
  0x1e   :  { %s188_s17 = smov (!%p35_p7, %s102_s17), %s184_s16  ;;  %s190_s0 = smov (%p35_p7, %s186_s0), 3 }
  0x1f   :  { %p39_p8 = scmp.ge.f32.partialorder %s103_s18, %s188_s17 }
  0x21   :  { %s192_s18 = smov (!%p39_p8, %s103_s18), %s188_s17  ;;  %s194_s0 = smov (%p39_p8, %s190_s0), 4 }
  0x22   :  { %p43_p9 = scmp.ge.f32.partialorder %s104_s19, %s192_s18 }
  0x24   :  { %s196_s19 = smov (!%p43_p9, %s104_s19), %s192_s18  ;;  %s198_s0 = smov (%p43_p9, %s194_s0), 5 }
  0x25   :  { %p47_p10 = scmp.ge.f32.partialorder %s105_s20, %s196_s19 }
  0x27   :  { %s200_s20 = smov (!%p47_p10, %s105_s20), %s196_s19  ;;  %s202_s0 = smov (%p47_p10, %s198_s0), 6 }
  0x28   :  { %p51_p11 = scmp.ge.f32.partialorder %s106_s21, %s200_s20 }
  0x2a   :  { %s204_s0 = smov (%p51_p11, %s202_s0), 7 }
  0x2b   :  { %s53_s26 = scalar_lea.vmem %s179_s1, %s204_s0 }
  0x2c   :  { %v107_v1 = vld [vmem:[%s53_s26] ss:$0 sm:$0xff] }
  0x2d   :  { %v60_v2 = vmul.f32 %v107_v1, %v55_v0 }
  0x2f   :  { %v62_v3 = vsel %vm61_vm0, %v60_v2, 0.0 }
  0x30   :  { %63 = vadd.xlane.f32.xlu0 %v62_v3 }
  0xbd   :  { %v64_v4 = vpop.xlane.xlu0 %63 }
  0xbe   :  { %v65_v5 = vsub.f32 %v64_v4, %v55_v0 }
  0xc0   :  { %v66_v6 = vmul.f32 %v65_v5, %v65_v5 }
  0xc2   :  { %68 = vrot.lane.b32.xlu0 %v66_v6, %s140_s27 }
 0x134   :  { %v69_v7 = vpop.permute.xlu0 %68 }
 0x135   :  { %v72_v8 = vsel %vm71_vm1, %v69_v7, 0.0 }
 0x136   :  { %73 = vadd.xlane.f32.xlu1 %v72_v8 }
 0x1c3   :  { %v74_v9 = vpop.xlane.xlu1 %73 }
 0x1c4   :  { %v75_v10 = vrot.slane %v74_v9, 4 }
 0x1c6   :  { %v76_v11 = vadd.f32 %v75_v10, %v74_v9 }
 0x1c8   :  { %v77_v12 = vrot.slane %v76_v11, 2 }
 0x1ca   :  { %v78_v13 = vadd.f32 %v77_v12, %v76_v11 }
 0x1cc   :  { %v79_v14 = vrot.slane %v78_v13, 1 }
 0x1ce   :  { %v80_v15 = vadd.f32 %v79_v14, %v78_v13 }
 0x1d0   :  { %108 = vpush %v80_v15 }
 0x201   :  { %s109_s1 = spop %108 }
 0x202   :  { %s82_s28 = smul.f32 0.25, %s109_s1 }
 0x204   :  { %84 = sst [smem:[#allocation5]] %s82_s28 }
 0x205   :  { %134 = shalt.err (!%p131_p0)
}
 0x206   :  { %s141_s8 = smov [#allocation5]  }
 0x207   :  { %92 = dma.smem_to_hbm %s141_s8, 16, %s180_s2, [#allocation3]  }
 0x208   :  { %137 = dma.done.wait [#allocation3], 16  }
 0x209   :  { %138 = vsyncadd [#allocation3], 4294967280 }
 0x20a   :  { %96 = sfence }
 0x20b   :  { %97 = vsyncpa [#allocation3], 1 }
 0x20c   :  { %98 = vsyncpa [#allocation4], 1 }

</bundles_post_ra>
